<compile_context>
chip_gen: v5e
topology: v5e:2x2
jax: 0.10.0
libtpu: 0.0.40
codegen_flags: <defaults>
</compile_context>

<pallas_src>
import functools
import math

import jax
import jax.numpy as jnp
from jax.experimental import pallas as pl
from jax.experimental.pallas import tpu as pltpu


# ----------------------------- kernels ------------------------------------


def _phi_full_n_kernel(x_ref, w1_ref, w2_ref, bdiff_ref, o_ref, *, tb):
    """Single-pass path: one grid step = `tb` batch elements, full N resident.

    x_ref     : (tb, C_in, N)   streamed input (bf16 by default)
    w1_ref    : (C_out, C_in)   BN1-folded conv1 weight (f32)
    w2_ref    : (C_out, C_in)   BN2-folded conv2 weight (f32)
    bdiff_ref : (C_out, 1)      folded bias column (bn2_b - bn1_b), f32
    o_ref     : (tb, C_out, N)
    """
    w1 = w1_ref[...]
    w2 = w2_ref[...]

    # Batched max-pool over the lane (N) axis, then ONE small matmul for all tb
    # batch elements: ym[:, b] = W1eff @ max_n x[b].
    xm = jnp.max(x_ref[...], axis=-1).astype(jnp.float32)            # (tb, C_in)
    ym = jax.lax.dot_general(w1, xm, (((1,), (1,)), ((), ())),
                             preferred_element_type=jnp.float32)     # (C_out, tb)
    col = bdiff_ref[...] - ym                                         # (C_out, tb)

    for b in range(tb):  # small static unroll (tb is capped at 8)
        xb = x_ref[b].astype(jnp.float32)                             # (C_in, N)
        y = jnp.dot(w2, xb, preferred_element_type=jnp.float32)      # (C_out, N)
        o_ref[b] = jnp.maximum(y + col[:, b:b + 1], 0.0).astype(o_ref.dtype)


def _phi_chunked_kernel(x_ref, w2_ref, col_ref, o_ref, *, tb):
    """Large-N fallback: grid = (batch_blocks, n_blocks).

    The max over the full point dimension is a cross-chunk dependency, so it is
    hoisted to the wrapper (tiny XLA reduction + matmul) and passed in as the
    pre-combined per-batch bias column  col = bdiff - W1eff @ max_n x.

    x_ref   : (tb, C_in, TN)
    w2_ref  : (C_out, C_in)
    col_ref : (tb, C_out, 1)
    o_ref   : (tb, C_out, TN)
    """
    # TODO(synk): in this fallback the max-pool branch runs in the XLA wrapper,
    #             not in-kernel (it needs a second pass over x either way).
    w2 = w2_ref[...]
    for b in range(tb):
        xb = x_ref[b].astype(jnp.float32)
        y = jnp.dot(w2, xb, preferred_element_type=jnp.float32)
        o_ref[b] = jnp.maximum(y + col_ref[b], 0.0).astype(o_ref.dtype)


# ----------------------------- wrapper -------------------------------------


def _fold_bn(w, gamma, beta, mean, var, eps):
    """Fold inference-mode BatchNorm1d into a conv1x1 weight + bias."""
    scale = gamma / jnp.sqrt(var + eps)
    return w * scale[:, None], beta - mean * scale


def _vmem_capacity_bytes():
    try:
        cap = getattr(pltpu.get_tpu_info(), "vmem_capacity_bytes", None)
        if cap:
            return int(cap)
    except Exception:
        pass
    return 64 << 20  # conservative fallback (v7x per-TensorCore VMEM)


def phi_forward(x, params, *, eps=1e-5, tb=None, n_tile=None,
                stream_dtype=jnp.bfloat16, interpret=False):
    """x: (B, C_in, N) float32 -> (B, C_out, N) float32 (eval-mode Phi)."""
    B, C_in, N = x.shape
    w1 = params["conv1_w"]
    w2 = params["conv2_w"]
    C_out = w1.shape[0]
    out_dtype = x.dtype

    # Fold eval-mode BatchNorm into the conv weights + a single bias column.
    w1_eff, b1_eff = _fold_bn(w1, params["bn1_gamma"], params["bn1_beta"],
                              params["bn1_mean"], params["bn1_var"], eps)
    w2_eff, b2_eff = _fold_bn(w2, params["bn2_gamma"], params["bn2_beta"],
                              params["bn2_mean"], params["bn2_var"], eps)
    w1_eff = w1_eff.astype(jnp.float32)
    w2_eff = w2_eff.astype(jnp.float32)
    bdiff = (b2_eff - b1_eff).reshape(C_out, 1).astype(jnp.float32)

    # --- per-generation VMEM budget & tile sizing ---------------------------
    lane = 128
    in_isz = jnp.dtype(stream_dtype).itemsize
    out_isz = jnp.dtype(out_dtype).itemsize
    per_col = C_in * in_isz + C_out * out_isz             # bytes / point / batch-elem
    vmem_cap = _vmem_capacity_bytes()
    block_budget = max(2 << 20, vmem_cap // 8)             # per-step (in+out) block target

    if n_tile is None:
        full_tiles = -(-N // lane)
        fit_tiles = max(1, block_budget // (lane * per_col))
        n_tile = lane * min(full_tiles, fit_tiles)
    else:
        assert n_tile % lane == 0, "n_tile must be a multiple of 128"
    n_blocks = -(-N // n_tile)
    N_pad = n_blocks * n_tile
    single_pass = (n_blocks == 1)

    per_b = n_tile * per_col
    if tb is None:
        tb = max(1, min(B, 8, block_budget // per_b))       # cap the static unroll
        if single_pass and B >= 2:
            tb = min(tb, max(1, B // 2))                    # >=2 grid steps (v7x: 2 TCs)
        while B % tb:
            tb -= 1
    assert B % tb == 0, "tb must divide the batch size"

    # Pad N with edge values (max unaffected; padded output columns sliced off)
    # so output stores are unmasked full-lane vst.
    x_in = x.astype(stream_dtype)
    if N_pad != N:
        x_in = jnp.pad(x_in, ((0, 0), (0, 0), (0, N_pad - N)), mode="edge")

    # Explicit VMEM limit: double-buffered in/out blocks + constants + margin.
    in_blk = tb * C_in * n_tile * in_isz
    out_blk = tb * C_out * n_tile * out_isz
    const_b = (2 * C_out * C_in + C_out + B * C_out) * 4
    needed = 2 * (in_blk + out_blk) + const_b + (4 << 20)
    vmem_limit = int(min(max(needed, 32 << 20), int(0.9 * vmem_cap)))

    cost = pl.CostEstimate(
        flops=int(2 * B * C_out * C_in * (N_pad + 1)),
        transcendentals=0,
        bytes_accessed=int(B * N_pad * per_col + const_b),
    )

    if single_pass:
        kernel = functools.partial(_phi_full_n_kernel, tb=tb)
        grid = (B // tb,)
        in_specs = [
            pl.BlockSpec((tb, C_in, n_tile), lambda b: (b, 0, 0)),   # x tile
            pl.BlockSpec((C_out, C_in), lambda b: (0, 0)),           # W1eff
            pl.BlockSpec((C_out, C_in), lambda b: (0, 0)),           # W2eff
            pl.BlockSpec((C_out, 1), lambda b: (0, 0)),              # bias column
        ]
        out_specs = pl.BlockSpec((tb, C_out, n_tile), lambda b: (b, 0, 0))
        dim_sem = ("parallel",)
        args = (x_in, w1_eff, w2_eff, bdiff)
    else:
        # Large-N fallback: fold the max-pool branch + bias into a per-batch
        # (C_out, 1) column in the wrapper and stream only W2eff @ x_chunk.
        xm = jnp.max(x_in, axis=-1).astype(jnp.float32)               # (B, C_in)
        col = (bdiff[:, 0][None, :] - xm @ w1_eff.T)[:, :, None]       # (B, C_out, 1)
        kernel = functools.partial(_phi_chunked_kernel, tb=tb)
        grid = (B // tb, n_blocks)
        in_specs = [
            pl.BlockSpec((tb, C_in, n_tile), lambda b, n: (b, 0, n)),  # x chunk
            pl.BlockSpec((C_out, C_in), lambda b, n: (0, 0)),          # W2eff
            pl.BlockSpec((tb, C_out, 1), lambda b, n: (b, 0, 0)),      # folded column
        ]
        out_specs = pl.BlockSpec((tb, C_out, n_tile), lambda b, n: (b, 0, n))
        dim_sem = ("parallel", "parallel")
        args = (x_in, w2_eff, col.astype(jnp.float32))

    out = pl.pallas_call(
        kernel,
        out_shape=jax.ShapeDtypeStruct((B, C_out, N_pad), out_dtype),
        grid_spec=pltpu.PrefetchScalarGridSpec(
            num_scalar_prefetch=0,
            grid=grid,
            in_specs=in_specs,
            out_specs=out_specs,
        ),
        compiler_params=pltpu.CompilerParams(
            dimension_semantics=dim_sem,
            vmem_limit_bytes=vmem_limit,
        ),
        cost_estimate=cost,
        interpret=interpret,
    )(*args)

    return out if N_pad == N else out[..., :N]


def phi_reference(x, params, *, eps=1e-5):
    """Pure-JAX reference mirroring the PyTorch Phi forward (eval-mode BN)."""
    def bn(y, g, b, m, v):
        inv = 1.0 / jnp.sqrt(v + eps)
        return (y - m[None, :, None]) * inv[None, :, None] * g[None, :, None] + b[None, :, None]

    xm = jnp.max(x, axis=-1, keepdims=True)
    xm = bn(jnp.einsum("oi,bil->bol", params["conv1_w"], xm),
            params["bn1_gamma"], params["bn1_beta"],
            params["bn1_mean"], params["bn1_var"])
    y = bn(jnp.einsum("oi,bin->bon", params["conv2_w"], x),
           params["bn2_gamma"], params["bn2_beta"],
           params["bn2_mean"], params["bn2_var"])
    return jax.nn.relu(y - xm)


if __name__ == "__main__":
    key = jax.random.PRNGKey(0)
    ks = jax.random.split(key, 12)

    C_in, C_out = 8, 16
    bound = 1.0 / math.sqrt(C_in)
    params = dict(
        conv1_w=jax.random.uniform(ks[0], (C_out, C_in), jnp.float32, -bound, bound),
        conv2_w=jax.random.uniform(ks[1], (C_out, C_in), jnp.float32, -bound, bound),
        bn1_gamma=jax.random.uniform(ks[2], (C_out,), jnp.float32, 0.5, 1.5),
        bn1_beta=jax.random.normal(ks[3], (C_out,), jnp.float32) * 0.1,
        bn1_mean=jax.random.normal(ks[4], (C_out,), jnp.float32) * 0.1,
        bn1_var=jax.random.uniform(ks[5], (C_out,), jnp.float32, 0.5, 1.5),
        bn2_gamma=jax.random.uniform(ks[6], (C_out,), jnp.float32, 0.5, 1.5),
        bn2_beta=jax.random.normal(ks[7], (C_out,), jnp.float32) * 0.1,
        bn2_mean=jax.random.normal(ks[8], (C_out,), jnp.float32) * 0.1,
        bn2_var=jax.random.uniform(ks[9], (C_out,), jnp.float32, 0.5, 1.5),
    )

    def check(x, out):
        # Compare against the reference evaluated on the bf16-rounded input so the
        # only remaining differences are the f32 BN fold / accumulation order.
        x_r = x.astype(jnp.bfloat16).astype(jnp.float32)
        ref = jax.block_until_ready(phi_reference(x_r, params))
        assert out.shape == ref.shape
        err = jnp.max(jnp.abs(out - ref))
        assert jnp.allclose(out, ref, rtol=1e-4, atol=1e-4), f"mismatch, max abs err={err}"

    # 1) Single-pass path (full N per block); auto tb -> tb=2, grid=(2,).
    x1 = jax.random.normal(ks[10], (4, C_in, 128), jnp.float32)
    out1 = jax.block_until_ready(phi_forward(x1, params))
    check(x1, out1)

    # 2) Chunked large-N fallback (forced n_tile) with N not a multiple of 128
    #    (exercises lane padding + output slicing), grid=(1, 2).
    x2 = jax.random.normal(ks[11], (2, C_in, 200), jnp.float32)
    out2 = jax.block_until_ready(phi_forward(x2, params, n_tile=128))
    check(x2, out2)

    print("KERNEL_OK")
</pallas_src>

<mosaic_0001>
module attributes {stable_mosaic.version = 11 : i64} {
  func.func @_phi_full_n_kernel(%arg0: i32, %arg1: memref<2x8x128xbf16, #tpu.memory_space<vmem>>, %arg2: memref<16x8xf32, #tpu.memory_space<vmem>>, %arg3: memref<16x8xf32, #tpu.memory_space<vmem>>, %arg4: memref<16x1xf32, #tpu.memory_space<vmem>>, %arg5: memref<2x16x128xf32, #tpu.memory_space<vmem>>) attributes {dimension_semantics = [#tpu.dimension_semantics<parallel>], iteration_bounds = array<i64: 2>, scalar_prefetch = 0 : i64, scratch_operands = 0 : i64, tpu.core_type = #tpu.core_type<tc>, window_params = [{transform_indices = @transform_0, window_bounds = array<i64: 2, 8, 128>}, {pipeline_mode = #tpu.pipeline_mode<synchronous>, transform_indices = @transform_1, window_bounds = array<i64: 16, 8>}, {pipeline_mode = #tpu.pipeline_mode<synchronous>, transform_indices = @transform_2, window_bounds = array<i64: 16, 8>}, {pipeline_mode = #tpu.pipeline_mode<synchronous>, transform_indices = @transform_3, window_bounds = array<i64: 16, 1>}, {transform_indices = @transform_4, window_bounds = array<i64: 2, 16, 128>}]} {
    %c0 = arith.constant 0 : index
    %c0_0 = arith.constant 0 : index
    %0 = vector.load %arg2[%c0, %c0_0] : memref<16x8xf32, #tpu.memory_space<vmem>>, vector<16x8xf32>
    %c0_1 = arith.constant 0 : index
    %c0_2 = arith.constant 0 : index
    %1 = vector.load %arg3[%c0_1, %c0_2] : memref<16x8xf32, #tpu.memory_space<vmem>>, vector<16x8xf32>
    %c0_3 = arith.constant 0 : index
    %c0_4 = arith.constant 0 : index
    %c0_5 = arith.constant 0 : index
    %2 = vector.load %arg1[%c0_3, %c0_4, %c0_5] : memref<2x8x128xbf16, #tpu.memory_space<vmem>>, vector<2x8x128xbf16>
    %cst = arith.constant dense<0xFF80> : vector<2x8xbf16>
    %3 = vector.multi_reduction <maximumf>, %2, %cst [2] : vector<2x8x128xbf16> to vector<2x8xbf16>
    %4 = arith.extf %3 : vector<2x8xbf16> to vector<2x8xf32>
    %cst_6 = arith.constant dense<0.000000e+00> : vector<16x2xf32>
    %5 = tpu.matmul %0, %4, %cst_6 {dimension_numbers = #tpu.dot_dimension_numbers<[1], [1], [0], [0], [0, 0, 1, 0], [], []>} : vector<16x8xf32>, vector<2x8xf32>, vector<16x2xf32> -> vector<16x2xf32>
    %c0_7 = arith.constant 0 : index
    %c0_8 = arith.constant 0 : index
    %6 = vector.load %arg4[%c0_7, %c0_8] : memref<16x1xf32, #tpu.memory_space<vmem>>, vector<16x1xf32>
    %7 = vector.broadcast %6 : vector<16x1xf32> to vector<16x2xf32>
    %8 = arith.subf %7, %5 : vector<16x2xf32>
    %c0_9 = arith.constant 0 : index
    %c0_10 = arith.constant 0 : index
    %c0_11 = arith.constant 0 : index
    %9 = vector.load %arg1[%c0_9, %c0_10, %c0_11] : memref<2x8x128xbf16, #tpu.memory_space<vmem>>, vector<1x8x128xbf16>
    %10 = vector.shape_cast %9 : vector<1x8x128xbf16> to vector<8x128xbf16>
    %11 = arith.extf %10 : vector<8x128xbf16> to vector<8x128xf32>
    %cst_12 = arith.constant dense<0.000000e+00> : vector<16x128xf32>
    %12 = tpu.matmul %1, %11, %cst_12 {dimension_numbers = #tpu.dot_dimension_numbers<[1], [0], [0], [1], [0, 0, 1, 1], [], []>} : vector<16x8xf32>, vector<8x128xf32>, vector<16x128xf32> -> vector<16x128xf32>
    %13 = vector.extract_strided_slice %8 {offsets = [0, 0], sizes = [16, 1], strides = [1, 1]} : vector<16x2xf32> to vector<16x1xf32>
    %14 = vector.broadcast %13 : vector<16x1xf32> to vector<16x128xf32>
    %15 = arith.addf %12, %14 : vector<16x128xf32>
    %cst_13 = arith.constant 0.000000e+00 : f32
    %16 = vector.broadcast %cst_13 : f32 to vector<16x128xf32>
    %17 = arith.maximumf %15, %16 : vector<16x128xf32>
    %c0_14 = arith.constant 0 : index
    %c0_15 = arith.constant 0 : index
    %c0_16 = arith.constant 0 : index
    %18 = vector.load %arg5[%c0_14, %c0_15, %c0_16] : memref<2x16x128xf32, #tpu.memory_space<vmem>>, vector<1x16x128xf32>
    %19 = vector.shape_cast %18 : vector<1x16x128xf32> to vector<16x128xf32>
    %20 = vector.shape_cast %17 : vector<16x128xf32> to vector<1x16x128xf32>
    tpu.vector_store %arg5[%c0_14, %c0_15, %c0_16], %20 {strides = array<i32>} : memref<2x16x128xf32, #tpu.memory_space<vmem>>, vector<1x16x128xf32>,
    %c1 = arith.constant 1 : index
    %c0_17 = arith.constant 0 : index
    %c0_18 = arith.constant 0 : index
    %21 = vector.load %arg1[%c1, %c0_17, %c0_18] : memref<2x8x128xbf16, #tpu.memory_space<vmem>>, vector<1x8x128xbf16>
    %22 = vector.shape_cast %21 : vector<1x8x128xbf16> to vector<8x128xbf16>
    %23 = arith.extf %22 : vector<8x128xbf16> to vector<8x128xf32>
    %cst_19 = arith.constant dense<0.000000e+00> : vector<16x128xf32>
    %24 = tpu.matmul %1, %23, %cst_19 {dimension_numbers = #tpu.dot_dimension_numbers<[1], [0], [0], [1], [0, 0, 1, 1], [], []>} : vector<16x8xf32>, vector<8x128xf32>, vector<16x128xf32> -> vector<16x128xf32>
    %25 = vector.extract_strided_slice %8 {offsets = [0, 1], sizes = [16, 1], strides = [1, 1]} : vector<16x2xf32> to vector<16x1xf32>
    %26 = vector.broadcast %25 : vector<16x1xf32> to vector<16x128xf32>
    %27 = arith.addf %24, %26 : vector<16x128xf32>
    %cst_20 = arith.constant 0.000000e+00 : f32
    %28 = vector.broadcast %cst_20 : f32 to vector<16x128xf32>
    %29 = arith.maximumf %27, %28 : vector<16x128xf32>
    %c1_21 = arith.constant 1 : index
    %c0_22 = arith.constant 0 : index
    %c0_23 = arith.constant 0 : index
    %30 = vector.load %arg5[%c1_21, %c0_22, %c0_23] : memref<2x16x128xf32, #tpu.memory_space<vmem>>, vector<1x16x128xf32>
    %31 = vector.shape_cast %30 : vector<1x16x128xf32> to vector<16x128xf32>
    %32 = vector.shape_cast %29 : vector<16x128xf32> to vector<1x16x128xf32>
    tpu.vector_store %arg5[%c1_21, %c0_22, %c0_23], %32 {strides = array<i32>} : memref<2x16x128xf32, #tpu.memory_space<vmem>>, vector<1x16x128xf32>,
    return
  }
  func.func @transform_0(%arg0: i32) -> (i32, i32, i32) {
    %c0_i32 = arith.constant 0 : i32
    %c0_i32_0 = arith.constant 0 : i32
    %c0_i32_1 = arith.constant 0 : i32
    return %arg0, %c0_i32, %c0_i32_0 : i32, i32, i32
  }
  func.func @transform_1(%arg0: i32) -> (i32, i32) {
    %c0_i32 = arith.constant 0 : i32
    %c0_i32_0 = arith.constant 0 : i32
    %c0_i32_1 = arith.constant 0 : i32
    return %c0_i32, %c0_i32_0 : i32, i32
  }
  func.func @transform_2(%arg0: i32) -> (i32, i32) {
    %c0_i32 = arith.constant 0 : i32
    %c0_i32_0 = arith.constant 0 : i32
    %c0_i32_1 = arith.constant 0 : i32
    return %c0_i32, %c0_i32_0 : i32, i32
  }
  func.func @transform_3(%arg0: i32) -> (i32, i32) {
    %c0_i32 = arith.constant 0 : i32
    %c0_i32_0 = arith.constant 0 : i32
    %c0_i32_1 = arith.constant 0 : i32
    return %c0_i32, %c0_i32_0 : i32, i32
  }
  func.func @transform_4(%arg0: i32) -> (i32, i32, i32) {
    %c0_i32 = arith.constant 0 : i32
    %c0_i32_0 = arith.constant 0 : i32
    %c0_i32_1 = arith.constant 0 : i32
    return %arg0, %c0_i32, %c0_i32_0 : i32, i32, i32
  }
}

</mosaic_0001>

<bundles_post_ra>
// kernel: tpu_custom_call.1
= control target key start
LH: loop header
LB: loop body
LE: loop exit
PB: predicated region body
PF: predicated region fallthrough
CT: control target
= control target key end

     0   :  { %9 = vsyncpa [#allocation3], 0  ;;  %s712_s0 = inlined_call_operand.vmem [shape: bf16[4,8,128], index: 0, kind: input, shape index: {}]   ;;  %s713_s1 = inlined_call_operand.vmem [shape: f32[16,8], index: 1, kind: input, shape index: {}]   ;;  %s714_s2 = inlined_call_operand.vmem [shape: f32[16,8], index: 2, kind: input, shape index: {}]   ;;  %s715_s3 = inlined_call_operand.vmem [shape: f32[16,1], index: 3, kind: input, shape index: {}]   ;;  %s716_s4 = inlined_call_operand.hbm [shape: f32[4,16,128], index: 4, kind: output, shape index: {}]  }
   0x1   :  { %11 = vsyncpa [#allocation3 + $0x1], 0  ;;  %s602_s15 = smov 0   ;;  %s604_s16 = smov 0  }
   0x2   :  { %s606_s17 = smov 0   ;;  %s608_s18 = smov 0  }
   0x3 LB: > { %s623_s19 = sadd.s32 4294967295, %s571_s18   ;;  %s432_s20 = sadd.s32 4294967294, %s571_s18   ;;  %s571_s18 = sphi %s608_s18, %s722_s18   ;;  %s567_s17 = sphi %s606_s17, %s721_s17   ;;  %s563_s16 = sphi %s604_s16, %s720_s16   ;;  %s559_s15 = sphi %s602_s15, %s719_s15  }
   0x4   : > { %s627_s21 = sadd.s32 1, %s571_s18   ;;  %s113_s22 = sadd.s32 1, %s567_s17 }
   0x5   : > { %s110_s23 = ssub.s32 %s571_s18, %s627_s21  ;;  %p123_p0 = scmp.ne.s32.totalorder %s567_s17, %s563_s16 }
   0x6   : > { %p111_p1 = scmp.eq.s32.totalorder %s110_s23, 0  ;;  %p124_p2 = scmp.eq.s32.totalorder %s623_s19, 1 }
   0x7   : > { %p129_p3 = scmp.ne.s32.totalorder %s563_s16, %s559_s15  ;;  %p130_p4 = scmp.eq.s32.totalorder %s432_s20, 1 }
   0x8   : > { %s638_s24 = scalar_select %p111_p1, %s567_s17, %s113_s22  }
   0x9   : > { %p640_p5 = por %p124_p2, %p123_p0  ;;  %p644_p6 = por %p130_p4, %p129_p3 }
   0xa   : > { %p435_p7 = scmp.ge.s32.totalorder %s571_s18, 1  ;;  %p166_p8 = scmp.lt.s32.totalorder %s571_s18, 3 }
   0xc   : > { %p167_p9 = pnand %p435_p7, %p166_p8 }
   0xd   : > { %s437_s27 = sshll.u32 (!%p167_p9), %s623_s19, 1  ;;  %s456_s30 = sshll.u32 (!%p167_p9), %s623_s19, 5 }
   0xe   : > { %170 = sbr.rel (%p167_p9) target bundleno = 416 (0x1a0), region = 36  ;;  %p193_p10 = scmp.lt.s32.totalorder (!%p167_p9), %s437_s27, 3 }
   0xf   : > { %s366_s7 = scalar_lea.hbm (!%p167_p9), %s716_s4, %s456_s30  ;;  %s529_s14 = scalar_lea.hbm (!%p167_p9), %s716_s4, 64 }
  0x10   : > { %s369_s9 = sshll.u32 (!%p167_p9), %s366_s7, 4  ;;  %s370_s9 = int_to_ptr.hbm [resolvable:$true] %s369_s9 }
  0x11   : > { %s523_s19 = sshra.s32 (!%p167_p9), %s370_s9, 4  ;;  %s524_s19 = int_to_ptr.hbm [resolvable:$true] %s523_s19 }
  0x12   : > { %s525_s11 = scalar_lea.hbm (!%p167_p9), %s524_s19, 32  ;;  %p530_p0 = scmp.lt.s32.totalorder (!%p167_p9), %s524_s19, %s716_s4 }
  0x13   : > { %s724_s27 = smov (!%p193_p10, %s437_s27), 3  ;;  %v573_v3 = vmov 0   ;;  %v255_v4 = vld [vmem:[%s715_s3] sm:$0xff]  ;;  %vm223_vm0 = vcmask 64512   ;;  %v256_v9 = vld [vmem:[%s715_s3 + $0x8] sm:$0xff]  ;;  %v217_v12 = vlaneseq  ;;  %vm221_vm1 = vcmask 1041409   ;;  %p526_p11 = scmp.ne.s32.totalorder %s524_s19, %s525_s11 }
  0x14   : > { %s438_s28 = sshll.u32 %s724_s27, 2  ;;  %505 = vset.pattern.permute.xlu1 %v573_v3  ;;  %506 = vset.pattern.permute.xlu2 %v573_v3  ;;  %v201_v7 = vld [vmem:[%s714_s2] sm:$0xff]  ;;  %v202_v10 = vld [vmem:[%s714_s2 + $0x8] sm:$0xff]  ;;  %v574_v24 = vmov 1   ;;  %s189_s27 = sand.u32 1, %s563_s16  }
  0x15   : > { %s196_s5 = scalar_lea.vmem %s712_s0, %s438_s28  ;;  %259 = vperm.xlu1 %505, %v255_v4   ;;  %v218_v15 = vand.u32 127, %v217_v12  ;;  %v199_v22 = vld [vmem:[%s713_s1] sm:$0xff]  ;;  %v200_v23 = vld [vmem:[%s713_s1 + $0x8] sm:$0xff]  ;;  %507 = vset.pattern.permute.xlu0 %v574_v24  ;;  %s436_s28 = sshll.u32 %s189_s27, 5 }
  0x16   : > { %v458_v0 = vld [vmem:[%s196_s5] sm:$0xff]   ;;  %s191_s29 = scalar_lea.vmem [#allocation2], %s436_s28  ;;  %s354_s10 = scalar_lea.sflag [#allocation3], %s189_s27 }
  0x17   : > { %v459_v1 = vunpack.c.l.bf16 %v458_v0  ;;  %v460_v2 = vunpack.c.h.bf16 %v458_v0  ;;  %v269_v5 = vld [vmem:[%s196_s5] sm:$0xff]   ;;  %s367_s8 = sshll.u32 %s191_s29, 4  ;;  %p527_p12 = pnand %p526_p11, %p640_p5  ;;  %s368_s8 = int_to_ptr.vmem [resolvable:$true] %s367_s8 }
  0x18   : > { %v270_v6 = vunpack.c.l.bf16 %v269_v5  ;;  %v316_v8 = vunpack.c.h.bf16 %v269_v5  ;;  %p531_p1 = scmp.lt.s32.totalorder %s529_s14, %s525_s11 }
  0x19   : > { %207 = vmax.xlane.f32.xlu0 %v459_v1  ;;  %p528_p13 = pneg %p527_p12 }
  0x1a   : > { %302 = vmatpush.msra.mxu1 %v270_v6  ;;  %340 = vmatpush.msra.mxu2 %v316_v8  ;;  %p532_p2 = por %p531_p1, %p530_p0 }
  0x1b   : > { %442 = vmatmul.msk.f32.vlgmr.msra.gmra.mxu1 %vm223_vm0, %v201_v7  ;;  %445 = vmatmul.msk.f32.vlgmr.msra.gmra.mxu2 %vm223_vm0, %v201_v7 }
  0x1c   : > { %p533_p3 = pnand %p532_p2, %p528_p13 }
  0x1d   : > { %264 = vperm.xlu1 %505, %v256_v9  }
  0x21   : > { %209 = vmax.xlane.f32.xlu0 %v460_v2 }
  0x23   : > { %443 = vmatmul.msk.f32.gmra.mxu1 %vm223_vm0, %v202_v10  ;;  %446 = vmatmul.msk.f32.gmra.mxu2 %vm223_vm0, %v202_v10 }
  0x25   : > { %508 = vset.pattern.permute.xlu1 %v574_v24 }
  0x87   : > { %v260_v25 = vpop.permute.xlu1 %259 }
  0x8c   : > { %v208_v11 = vpop.xlane.xlu0 %207 }
  0x8d   : > { %v211_v13 = vpack.c.bf16 %v208_v11, %v208_v11 }
  0x8f   : > { %v213_v16 = vunpack.c.l.bf16 %v211_v13  ;;  %v265_v28 = vpop.permute.xlu1 %264 }
  0x91   : > { %v219_v19 = vperm.slane %v213_v16, %v218_v15 }
  0x94   : > { %v210_v14 = vpop.xlane.xlu0 %209 }
  0x95   : > { %v212_v17 = vpack.c.bf16 %v210_v14, %v210_v14 }
  0x97   : > { %v214_v18 = vunpack.c.l.bf16 %v212_v17 }
  0x98   : > { %v304_v31 = vpop.f32.mrf.mxu1 }
  0x99   : > { %v220_v20 = vperm.slane %v214_v18, %v218_v15 }
  0x9b   : > { %v222_v21 = vsel %vm221_vm1, %v220_v20, %v219_v19 }
  0x9c   : > { %439 = vmatpush.xpose.msk.msra.mxu0 %vm223_vm0, %v222_v21  ;;  %461 = vmatpush.xpose.msk.msra.mxu3 %vm223_vm0, %v222_v21 }
  0x9e   : > { %v342_v39 = vpop.f32.mrf.mxu2 }
  0x9f   : > { %440 = vmatmul.msk.f32.vlgmr.msra.gmra.mxu0 %vm223_vm0, %v199_v22  ;;  %441 = vmatmul.msk.f32.vlgmr.msra.gmra.mxu3 %vm223_vm0, %v200_v23 }
  0xa0   : > { %v307_v35 = vpop.f32.mrf.mxu1 }
  0xa6   : > { %v345_v43 = vpop.f32.mrf.mxu2 }
 0x11c   : > { %v249_v26 = vpop.f32.mrf.mxu0 }
 0x11d   : > { %v267_v27 = vsub.f32 %v260_v25, %v249_v26 }
 0x11f   : > { %318 = vperm.xlu0 %507, %v267_v27   ;;  %273 = vperm.xlu2 %506, %v267_v27  }
 0x122   : > { %v252_v29 = vpop.f32.mrf.mxu3 }
 0x123   : > { %v268_v30 = vsub.f32 %v265_v28, %v252_v29 }
 0x125   : > { %322 = vperm.xlu1 %508, %v268_v30  }
 0x127   : > { %278 = vperm.xlu2 %506, %v268_v30  }
 0x179   : > { %v274_v32 = vpop.permute.xlu2 %273 }
 0x17a   : > { %v305_v33 = vadd.f32 %v304_v31, %v274_v32 }
 0x17c   : > { %v310_v34 = vmax.f32 %v305_v33, 0.0 }
 0x17e   : > { %312 = vst [vmem:[%s191_s29] sm:$0xff] %v310_v34 }
 0x181   : > { %v279_v36 = vpop.permute.xlu2 %278 }
 0x182   : > { %v308_v37 = vadd.f32 %v307_v35, %v279_v36 }
 0x184   : > { %v311_v38 = vmax.f32 %v308_v37, 0.0 }
 0x186   : > { %313 = vst [vmem:[%s191_s29 + $0x8] sm:$0xff] %v311_v38 }
 0x191   : > { %v319_v40 = vpop.permute.xlu0 %318 }
 0x192   : > { %v343_v41 = vadd.f32 %v342_v39, %v319_v40 }
 0x194   : > { %v348_v42 = vmax.f32 %v343_v41, 0.0 }
 0x196   : > { %447 = vst [vmem:[%s191_s29 + $0x10] sm:$0xff] %v348_v42 }
 0x197   : > { %v323_v44 = vpop.permute.xlu1 %322 }
 0x198   : > { %v346_v45 = vadd.f32 %v345_v43, %v323_v44 }
 0x19a   : > { %v349_v46 = vmax.f32 %v346_v45, 0.0 }
 0x19c   : > { %448 = vst [vmem:[%s191_s29 + $0x18] sm:$0xff] %v349_v46 }
 0x19d   : > { %536 = shalt.err (!%p533_p3)
}
 0x19e   : > { %s575_s23 = smov 128   ;;  %s576_s27 = smov 8  }
 0x19f   : > { %462 = dma.vmem_to_hbm [thread:$0]  (%p640_p5), %s368_s8, 512, %s370_s9, %s354_s10, %s575_s23, %s575_s23, %s576_s27  }
 0x1a0 PF: > { %p468_p4 = scmp.ge.s32.totalorder %s571_s18, 2  ;;  %s384_s28 = sand.u32 1, %s559_s15  }
 0x1a1   : > { %s385_s29 = scalar_lea.sflag [#allocation3], %s384_s28 }
 0x1a2   : > { %p465_p7 = pnand %p468_p4, %p644_p6 }
 0x1a4   : > { %p466_p8 = pneg %p465_p7 }
 0x1a6   : > { %554 = dma.done.wait (%p466_p8), %s385_s29, 512  }
 0x1a7   : > { %556 = vsyncadd (%p466_p8), %s385_s29, 4294966784  ;;  %p14_p9 = scmp.ge.s32.totalorder %s627_s21, 4   ;;  %s719_s15 = smov %s563_s16 }
 0x1a8   : > { %s720_s16 = smov %s567_s17  ;;  %s721_s17 = smov %s638_s24 }
 0x1a9   : > { %s722_s18 = smov %s627_s21  ;;  %16 = sbr.rel (!%p14_p9) target bundleno = 3 (0x3), region = 73 }
 0x1ae   :  { %391 = vsyncpa [#allocation3], 1 }
 0x1af   :  { %393 = vsyncpa [#allocation3 + $0x1], 1 }

</bundles_post_ra>
